<compile_context>
chip_gen: v7x
topology: tpu7x:2x2x1
jax: 0.10.0
libtpu: 0.0.40
codegen_flags: <defaults>
</compile_context>

<pallas_src>
import jax
import jax.numpy as jnp
from jax.experimental import pallas as pl
from jax.experimental.pallas import tpu as pltpu


def _attention_kernel(enc_ref, dec_ref, w1e_ref, w1d_ref, b1_ref, w2_ref, o_ref):
    # enc_ref:  (TB*S, E)   encoder rows for TB batch elements (S rows each)
    # dec_ref:  (TB, Ddec)  decoder hidden state per batch element
    # w1e_ref:  (E, H)      linear1 weight, encoder part, pre-transposed
    # w1d_ref:  (Ddec, H)   linear1 weight, decoder part, pre-transposed
    # b1_ref:   (1, H)
    # w2_ref:   (1, H)      linear2 weight (bias dropped: cancels in softmax)
    # o_ref:    (TB, S)     softmax attention weights over the seq axis
    tb, S = o_ref.shape
    H = w1e_ref.shape[1]

    # Encoder projection: one big (TB*S, E) @ (E, H) MXU matmul.
    h_enc = jnp.dot(enc_ref[...], w1e_ref[...], preferred_element_type=jnp.float32)

    # Decoder projection: seq-invariant -> computed once per batch element.
    h_dec = jnp.dot(dec_ref[...], w1d_ref[...], preferred_element_type=jnp.float32)
    h_dec = h_dec + b1_ref[...]                                  # (TB, H)

    # Broadcast-add the decoder term over the seq axis, then ReLU.
    h = h_enc.reshape(tb, S, H) + h_dec[:, None, :]              # (TB, S, H)
    h = jnp.maximum(h, 0.0)

    # linear2: width-1 output -> VPU multiply + lane reduction (keeps MXU free).
    scores = jnp.sum(h * w2_ref[...].reshape(1, 1, H), axis=-1)  # (TB, S)

    # Softmax over the seq axis (== torch Softmax(dim=1) on (B, S, 1)).
    m = jnp.max(scores, axis=-1, keepdims=True)
    e = jnp.exp(scores - m)
    denom = jnp.sum(e, axis=-1, keepdims=True)
    o_ref[...] = (e / denom).astype(o_ref.dtype)


def attention_network(decoder_hidden_state, encoder_output, params, *, tb=None):
    """Pallas implementation of AttentionNetwork.forward.

    decoder_hidden_state: (1, B, decoder_hidden)
    encoder_output:       (S, B, 2*encoder_hidden)
    returns:              (B, S, 1)  softmax attention weights over seq axis
    """
    w1, b1, w2 = params["w1"], params["b1"], params["w2"]
    S, B, enc2 = encoder_output.shape
    dec = decoder_hidden_state.shape[-1]
    H = w1.shape[0]

    # Trace-time weight plumbing (hoisted out of the kernel).  torch concat
    # order is [decoder, encoder] along the feature dim, so w1.T rows split as
    # [0:dec) decoder part, [dec:) encoder part.
    w1_t = jnp.transpose(w1)                 # (dec + enc2, H)
    w1_dec_t = w1_t[:dec, :]                 # (dec, H)
    w1_enc_t = w1_t[dec:, :]                 # (enc2, H)
    b1_row = b1.reshape(1, H)
    w2_row = w2.reshape(1, H)
    # NOTE: linear2's bias is a constant added to every score; softmax is
    # shift-invariant, so it is dropped (bit-for-bit equivalent up to rounding).

    # Layout plumbing only: lane-dense (B*S, E) slab + (B, dec) decoder state.
    # No (B, S, Din) concat materialization, no decoder broadcast over S.
    enc_flat = jnp.transpose(encoder_output, (1, 0, 2)).reshape(B * S, enc2)
    dec_x = decoder_hidden_state.reshape(B, dec)

    # Batch-block size: target ~1024 rows (TB*S) per grid step, sublane-aligned.
    if tb is None:
        tb = max(1, min(B, 1024 // max(S, 1)))
    if tb < B:
        tb = max(8, (tb // 8) * 8)
        tb = min(tb, B)
    grid = (pl.cdiv(B, tb),)

    out = pl.pallas_call(
        _attention_kernel,
        out_shape=jax.ShapeDtypeStruct((B, S), encoder_output.dtype),
        grid=grid,
        in_specs=[
            pl.BlockSpec((tb * S, enc2), lambda b: (b, 0)),   # encoder rows
            pl.BlockSpec((tb, dec), lambda b: (b, 0)),        # decoder state
            pl.BlockSpec((enc2, H), lambda b: (0, 0)),        # w1 (encoder part)
            pl.BlockSpec((dec, H), lambda b: (0, 0)),         # w1 (decoder part)
            pl.BlockSpec((1, H), lambda b: (0, 0)),           # b1
            pl.BlockSpec((1, H), lambda b: (0, 0)),           # w2
        ],
        out_specs=pl.BlockSpec((tb, S), lambda b: (b, 0)),
        compiler_params=pltpu.CompilerParams(
            dimension_semantics=("parallel",),
        ),
    )(enc_flat, dec_x, w1_enc_t, w1_dec_t, b1_row, w2_row)

    return out[:, :, None]                    # (B, S, 1), matching torch output


def init_params(key, encoder_hidden, decoder_hidden, attn_hidden=32):
    """Deterministic parameter init mimicking nn.Linear's uniform(-1/sqrt(fan_in))."""
    din = decoder_hidden + 2 * encoder_hidden
    k1, k2, k3, k4 = jax.random.split(key, 4)
    bound1 = 1.0 / jnp.sqrt(din)
    bound2 = 1.0 / jnp.sqrt(attn_hidden)
    return {
        "w1": jax.random.uniform(k1, (attn_hidden, din), jnp.float32, -bound1, bound1),
        "b1": jax.random.uniform(k2, (attn_hidden,), jnp.float32, -bound1, bound1),
        "w2": jax.random.uniform(k3, (1, attn_hidden), jnp.float32, -bound2, bound2),
        "b2": jax.random.uniform(k4, (1,), jnp.float32, -bound2, bound2),
    }


def _reference(decoder_hidden_state, encoder_output, params):
    """Pure-JAX reference matching the torch module exactly (including b2)."""
    S, B, _ = encoder_output.shape
    dec = decoder_hidden_state.shape[-1]
    dec_exp = jnp.broadcast_to(decoder_hidden_state, (S, B, dec))
    x = jnp.concatenate([dec_exp, encoder_output], axis=2)
    x = jnp.transpose(x, (1, 0, 2))                                  # (B, S, Din)
    h = jnp.maximum(x @ params["w1"].T + params["b1"], 0.0)
    s = h @ params["w2"].T + params["b2"]                            # (B, S, 1)
    return jax.nn.softmax(s, axis=1)


if __name__ == "__main__":
    encoder_hidden = 16
    decoder_hidden = 32
    attn_hidden = 32
    batch = 2
    seq = 8

    key = jax.random.PRNGKey(0)
    kp, kd, ke = jax.random.split(key, 3)

    params = init_params(kp, encoder_hidden, decoder_hidden, attn_hidden)

    decoder_hidden_state = jax.random.normal(kd, (1, batch, decoder_hidden), jnp.float32)
    encoder_output = jax.random.normal(ke, (seq, batch, 2 * encoder_hidden), jnp.float32)

    out = attention_network(decoder_hidden_state, encoder_output, params)
    out = jax.block_until_ready(out)

    ref = _reference(decoder_hidden_state, encoder_output, params)
    assert out.shape == (batch, seq, 1), out.shape
    assert jnp.allclose(out, ref, atol=1e-5, rtol=1e-5), "mismatch vs reference"
    assert jnp.allclose(jnp.sum(out, axis=1), 1.0, atol=1e-5), "softmax not normalized"

    print("KERNEL_OK")
</pallas_src>

<mosaic_0001>
module attributes {stable_mosaic.version = 11 : i64} {
  func.func @_attention_kernel(%arg0: i32, %arg1: memref<16x32xf32, #tpu.memory_space<vmem>>, %arg2: memref<2x32xf32, #tpu.memory_space<vmem>>, %arg3: memref<32x32xf32, #tpu.memory_space<vmem>>, %arg4: memref<32x32xf32, #tpu.memory_space<vmem>>, %arg5: memref<1x32xf32, #tpu.memory_space<vmem>>, %arg6: memref<1x32xf32, #tpu.memory_space<vmem>>, %arg7: memref<2x8xf32, #tpu.memory_space<vmem>>) attributes {dimension_semantics = [#tpu.dimension_semantics<parallel>], iteration_bounds = array<i64: 1>, scalar_prefetch = 0 : i64, scratch_operands = 0 : i64, tpu.core_type = #tpu.core_type<tc>, window_params = [{transform_indices = @transform_0, window_bounds = array<i64: 16, 32>}, {transform_indices = @transform_1, window_bounds = array<i64: 2, 32>}, {pipeline_mode = #tpu.pipeline_mode<synchronous>, transform_indices = @transform_2, window_bounds = array<i64: 32, 32>}, {pipeline_mode = #tpu.pipeline_mode<synchronous>, transform_indices = @transform_3, window_bounds = array<i64: 32, 32>}, {pipeline_mode = #tpu.pipeline_mode<synchronous>, transform_indices = @transform_4, window_bounds = array<i64: 1, 32>}, {pipeline_mode = #tpu.pipeline_mode<synchronous>, transform_indices = @transform_5, window_bounds = array<i64: 1, 32>}, {transform_indices = @transform_6, window_bounds = array<i64: 2, 8>}]} {
    %c0 = arith.constant 0 : index
    %c0_0 = arith.constant 0 : index
    %0 = vector.load %arg1[%c0, %c0_0] : memref<16x32xf32, #tpu.memory_space<vmem>>, vector<16x32xf32>
    %c0_1 = arith.constant 0 : index
    %c0_2 = arith.constant 0 : index
    %1 = vector.load %arg3[%c0_1, %c0_2] : memref<32x32xf32, #tpu.memory_space<vmem>>, vector<32x32xf32>
    %cst = arith.constant dense<0.000000e+00> : vector<16x32xf32>
    %2 = tpu.matmul %0, %1, %cst {dimension_numbers = #tpu.dot_dimension_numbers<[1], [0], [0], [1], [0, 0, 1, 1], [], []>} : vector<16x32xf32>, vector<32x32xf32>, vector<16x32xf32> -> vector<16x32xf32>
    %c0_3 = arith.constant 0 : index
    %c0_4 = arith.constant 0 : index
    %3 = vector.load %arg2[%c0_3, %c0_4] : memref<2x32xf32, #tpu.memory_space<vmem>>, vector<2x32xf32>
    %c0_5 = arith.constant 0 : index
    %c0_6 = arith.constant 0 : index
    %4 = vector.load %arg4[%c0_5, %c0_6] : memref<32x32xf32, #tpu.memory_space<vmem>>, vector<32x32xf32>
    %cst_7 = arith.constant dense<0.000000e+00> : vector<2x32xf32>
    %5 = tpu.matmul %3, %4, %cst_7 {dimension_numbers = #tpu.dot_dimension_numbers<[1], [0], [0], [1], [0, 0, 1, 1], [], []>} : vector<2x32xf32>, vector<32x32xf32>, vector<2x32xf32> -> vector<2x32xf32>
    %c0_8 = arith.constant 0 : index
    %c0_9 = arith.constant 0 : index
    %6 = vector.load %arg5[%c0_8, %c0_9] : memref<1x32xf32, #tpu.memory_space<vmem>>, vector<1x32xf32>
    %7 = vector.broadcast %6 : vector<1x32xf32> to vector<2x32xf32>
    %8 = arith.addf %5, %7 : vector<2x32xf32>
    %9 = vector.shape_cast %2 : vector<16x32xf32> to vector<2x8x32xf32>
    %10 = vector.shape_cast %8 : vector<2x32xf32> to vector<2x1x32xf32>
    %11 = vector.broadcast %10 : vector<2x1x32xf32> to vector<2x8x32xf32>
    %12 = arith.addf %9, %11 : vector<2x8x32xf32>
    %cst_10 = arith.constant 0.000000e+00 : f32
    %13 = vector.broadcast %cst_10 : f32 to vector<2x8x32xf32>
    %14 = arith.maximumf %12, %13 : vector<2x8x32xf32>
    %c0_11 = arith.constant 0 : index
    %c0_12 = arith.constant 0 : index
    %15 = vector.load %arg6[%c0_11, %c0_12] : memref<1x32xf32, #tpu.memory_space<vmem>>, vector<1x32xf32>
    %16 = vector.shape_cast %15 : vector<1x32xf32> to vector<1x1x32xf32>
    %17 = vector.broadcast %16 : vector<1x1x32xf32> to vector<2x8x32xf32>
    %18 = arith.mulf %14, %17 : vector<2x8x32xf32>
    %cst_13 = arith.constant dense<0.000000e+00> : vector<2x8xf32>
    %19 = vector.multi_reduction <add>, %18, %cst_13 [2] : vector<2x8x32xf32> to vector<2x8xf32>
    %cst_14 = arith.constant dense<0xFF800000> : vector<2xf32>
    %20 = vector.multi_reduction <maximumf>, %19, %cst_14 [1] : vector<2x8xf32> to vector<2xf32>
    %21 = vector.shape_cast %20 : vector<2xf32> to vector<2x1xf32>
    %22 = vector.broadcast %21 : vector<2x1xf32> to vector<2x8xf32>
    %23 = arith.subf %19, %22 : vector<2x8xf32>
    %24 = math.exp %23 : vector<2x8xf32>
    %cst_15 = arith.constant dense<0.000000e+00> : vector<2xf32>
    %25 = vector.multi_reduction <add>, %24, %cst_15 [1] : vector<2x8xf32> to vector<2xf32>
    %26 = vector.shape_cast %25 : vector<2xf32> to vector<2x1xf32>
    %27 = vector.broadcast %26 : vector<2x1xf32> to vector<2x8xf32>
    %28 = arith.divf %24, %27 : vector<2x8xf32>
    %c0_16 = arith.constant 0 : index
    %c0_17 = arith.constant 0 : index
    %29 = vector.load %arg7[%c0_16, %c0_17] : memref<2x8xf32, #tpu.memory_space<vmem>>, vector<2x8xf32>
    tpu.vector_store %arg7[%c0_16, %c0_17], %28 {strides = array<i32>} : memref<2x8xf32, #tpu.memory_space<vmem>>, vector<2x8xf32>,
    return
  }
  func.func @transform_0(%arg0: i32) -> (i32, i32) {
    %c0_i32 = arith.constant 0 : i32
    %c0_i32_0 = arith.constant 0 : i32
    return %arg0, %c0_i32 : i32, i32
  }
  func.func @transform_1(%arg0: i32) -> (i32, i32) {
    %c0_i32 = arith.constant 0 : i32
    %c0_i32_0 = arith.constant 0 : i32
    return %arg0, %c0_i32 : i32, i32
  }
  func.func @transform_2(%arg0: i32) -> (i32, i32) {
    %c0_i32 = arith.constant 0 : i32
    %c0_i32_0 = arith.constant 0 : i32
    %c0_i32_1 = arith.constant 0 : i32
    return %c0_i32, %c0_i32_0 : i32, i32
  }
  func.func @transform_3(%arg0: i32) -> (i32, i32) {
    %c0_i32 = arith.constant 0 : i32
    %c0_i32_0 = arith.constant 0 : i32
    %c0_i32_1 = arith.constant 0 : i32
    return %c0_i32, %c0_i32_0 : i32, i32
  }
  func.func @transform_4(%arg0: i32) -> (i32, i32) {
    %c0_i32 = arith.constant 0 : i32
    %c0_i32_0 = arith.constant 0 : i32
    %c0_i32_1 = arith.constant 0 : i32
    return %c0_i32, %c0_i32_0 : i32, i32
  }
  func.func @transform_5(%arg0: i32) -> (i32, i32) {
    %c0_i32 = arith.constant 0 : i32
    %c0_i32_0 = arith.constant 0 : i32
    %c0_i32_1 = arith.constant 0 : i32
    return %c0_i32, %c0_i32_0 : i32, i32
  }
  func.func @transform_6(%arg0: i32) -> (i32, i32) {
    %c0_i32 = arith.constant 0 : i32
    %c0_i32_0 = arith.constant 0 : i32
    return %arg0, %c0_i32 : i32, i32
  }
}

</mosaic_0001>

<bundles_post_ra>
// kernel: tpu_custom_call.1
= control target key start
LH: loop header
LB: loop body
LE: loop exit
PB: predicated region body
PF: predicated region fallthrough
CT: control target
= control target key end

     0   :  { %11 = vsyncpa [#allocation3], 0  ;;  %s700_s0 = inlined_call_operand.hbm [shape: f32[16,32], index: 0, kind: input, shape index: {}]   ;;  %s701_s1 = inlined_call_operand.vmem [shape: f32[2,32], index: 1, kind: input, shape index: {}]   ;;  %s702_s2 = inlined_call_operand.hbm [shape: f32[32,32], index: 2, kind: input, shape index: {}]   ;;  %s703_s3 = inlined_call_operand.hbm [shape: f32[32,32], index: 3, kind: input, shape index: {}]   ;;  %s704_s4 = inlined_call_operand.vmem [shape: f32[1,32], index: 4, kind: input, shape index: {}]   ;;  %s705_s5 = inlined_call_operand.vmem [shape: f32[1,32], index: 5, kind: input, shape index: {}]   ;;  %s706_s6 = inlined_call_operand.hbm [shape: f32[2,8], index: 6, kind: output, shape index: {}]  }
   0x1   :  { %12 = vsyncpa [#allocation6], 0 }
   0x2   :  { %13 = vsyncpa [#allocation4], 0  ;;  %s564_s21 = smov [#allocation5]   ;;  %s565_s23 = smov [#allocation2]  }
   0x3   :  { %s33_s22 = sshll.u32 %s564_s21, 4  ;;  %s19_s24 = sshll.u32 %s565_s23, 4  ;;  %s34_s22 = int_to_ptr.vmem [resolvable:$true] %s33_s22  ;;  %s610_s24 = int_to_ptr.vmem [resolvable:$true] %s19_s24 }
   0x4   :  { %s470_s27 = scalar_lea.hbm %s702_s2, 512 }
   0x5   :  { %p471_p0 = scmp.ne.s32.totalorder %s702_s2, %s470_s27  ;;  %p474_p1 = scmp.lt.u32.totalorder %s470_s27, %s702_s2 }
   0x7   :  { %p476_p2 = pnand %p474_p1, %p471_p0 }
   0x9   :  { %479 = shalt.err (!%p476_p2)
}
   0xa   :  { %s480_s8 = scalar_lea.vmem %s34_s22, 512  ;;  %p485_p4 = scmp.lt.s32.totalorder %s34_s22, %s34_s22 }
   0xb   :  { %p481_p3 = scmp.ne.s32.totalorder %s34_s22, %s480_s8  ;;  %p486_p5 = scmp.lt.s32.totalorder %s480_s8, %s480_s8 }
   0xd   :  { %p487_p6 = por %p486_p5, %p485_p4 }
   0xf   :  { %p488_p7 = pnand %p487_p6, %p481_p3 }
  0x11   :  { %491 = shalt.err (!%p488_p7)
}
  0x12   :  { %s566_s9 = smov 128   ;;  %s567_s10 = smov 8  }
  0x13   :  { %39 = dma.hbm_to_vmem [thread:$0]  %s702_s2, 512, %s34_s22, [#allocation6], %s566_s9, %s566_s9, %s567_s10  }
  0x14   :  { %s492_s15 = scalar_lea.hbm %s700_s0, 256 }
  0x15   :  { %p493_p8 = scmp.ne.s32.totalorder %s700_s0, %s492_s15  ;;  %p496_p9 = scmp.lt.u32.totalorder %s492_s15, %s700_s0 }
  0x17   :  { %p498_p10 = pnand %p496_p9, %p493_p8 }
  0x19   :  { %501 = shalt.err (!%p498_p10)
}
  0x1a   :  { %s502_s20 = scalar_lea.vmem %s610_s24, 256  ;;  %p507_p12 = scmp.lt.s32.totalorder %s610_s24, %s610_s24 }
  0x1b   :  { %p503_p11 = scmp.ne.s32.totalorder %s610_s24, %s502_s20  ;;  %p508_p13 = scmp.lt.s32.totalorder %s502_s20, %s502_s20 }
  0x1d   :  { %p509_p0 = por %p508_p13, %p507_p12 }
  0x1f   :  { %p510_p1 = pnand %p509_p0, %p503_p11 }
  0x21   :  { %513 = shalt.err (!%p510_p1)
}
  0x22   :  { %25 = dma.hbm_to_vmem [thread:$0]  %s700_s0, 256, %s610_s24, [#allocation3], %s566_s9, %s566_s9, %s567_s10  }
  0x23   :  { %s568_s22 = smov [#allocation7]   ;;  %s514_s27 = scalar_lea.hbm %s703_s3, 512 }
  0x24   :  { %s45_s23 = sshll.u32 %s568_s22, 4  ;;  %p515_p2 = scmp.ne.s32.totalorder %s703_s3, %s514_s27  ;;  %s46_s23 = int_to_ptr.vmem [resolvable:$true] %s45_s23 }
  0x25   :  { %p518_p3 = scmp.lt.u32.totalorder %s514_s27, %s703_s3 }
  0x27   :  { %p520_p4 = pnand %p518_p3, %p515_p2 }
  0x29   :  { %523 = shalt.err (!%p520_p4)
}
  0x2a   :  { %s524_s8 = scalar_lea.vmem %s46_s23, 512  ;;  %p529_p6 = scmp.lt.s32.totalorder %s46_s23, %s46_s23 }
  0x2b   :  { %p525_p5 = scmp.ne.s32.totalorder %s46_s23, %s524_s8  ;;  %p530_p7 = scmp.lt.s32.totalorder %s524_s8, %s524_s8 }
  0x2d   :  { %p531_p8 = por %p530_p7, %p529_p6 }
  0x2f   :  { %p532_p9 = pnand %p531_p8, %p525_p5 }
  0x31   :  { %535 = shalt.err (!%p532_p9)
}
  0x32   :  { %51 = dma.hbm_to_vmem [thread:$0]  %s703_s3, 512, %s46_s23, [#allocation6], %s566_s9, %s566_s9, %s567_s10  }
  0x33   :  { %558 = dma.done.wait [#allocation3], 256  }
  0x34   :  { %559 = vsyncadd [#allocation3], 4294967040 }
  0x35   :  { %560 = dma.done.wait [#allocation6], 1024  }
  0x36   :  { %561 = vsyncadd [#allocation6], 4294966272  ;;  %v569_v0 = vmov 0.0|0.0   ;;  %vm570_vm0 = vmmov 0   ;;  %v571_v1 = vmov 0.0   ;;  %v154_v2 = vld [vmem:[#allocation7] sm:$0xff]  ;;  %v242_v19 = vlaneseq }
  0x37   :  { %443 = vmatprep.subr.bf16.mxu1 %v569_v0  ;;  %432 = vmatprep.mubr.msk.f32.mxu1 %vm570_vm0, %v571_v1  ;;  %v155_v3 = vld [vmem:[#allocation7 + $0x8] sm:$0xff]  ;;  %v156_v4 = vld [vmem:[#allocation7 + $0x10] sm:$0xff]  ;;  %v157_v6 = vld [vmem:[#allocation7 + $0x18] sm:$0xff]  ;;  %vm71_vm1 = vcmask 261120   ;;  %v572_v17 = vmov 1966171168  }
  0x38   :  { %v444_v5 = vpack.c.bf16 %v155_v3, %v154_v2  ;;  %v67_v7 = vld [vmem:[#allocation5] sm:$0xff]  ;;  %v68_v8 = vld [vmem:[#allocation5 + $0x8] sm:$0xff]  ;;  %v69_v10 = vld [vmem:[#allocation5 + $0x10] sm:$0xff]  ;;  %v447_v12 = vpack.c.bf16 %v157_v6, %v156_v4  ;;  %v240_v18 = vunpack.c.l.s4 %v572_v17  ;;  %v668_v21 = vshrl.u32 %v242_v19, 7 }
  0x39   :  { %v435_v9 = vpack.c.bf16 %v68_v8, %v67_v7  ;;  %v70_v11 = vld [vmem:[#allocation5 + $0x18] sm:$0xff]  ;;  %v65_v14 = vld [vmem:[#allocation2] sm:$0xff]  ;;  %v293_v45 = vand.u32 127, %v242_v19  ;;  %vm302_vm2 = vcmask 1041409   ;;  %vm305_vm3 = vcmask 58368  }
  0x3a   :  { %445 = vmatpush3.bf16.msra.mxu1 %v444_v5  ;;  %v439_v13 = vpack.c.bf16 %v70_v11, %v69_v10  ;;  %421 = vmatprep.mubr.msk.f32.mxu0 %vm71_vm1, %v65_v14  ;;  %v153_v15 = vld [vmem:[%s701_s1] sm:$0x3]  ;;  %v66_v16 = vld [vmem:[#allocation2 + $0x8] sm:$0xff]  ;;  %v241_v20 = vunpack.c.0.s8 %v240_v18  ;;  %v263_v29 = vsub.s32 0, %v668_v21  ;;  %v573_v53 = vmov 0  }
  0x3b   :  { %446 = vmatprep.subr.bf16.mxu1 %v569_v0  ;;  %436 = vmatprep.subr.bf16.mxu0 %v435_v9  ;;  %v399_v22 = vld [vmem:[%s704_s4] ss:$0 sm:$0xff]  ;;  %v296_v47 = vsub.s32 %v293_v45, %v668_v21  ;;  %v316_v54 = vsub.s32 1, %v668_v21  ;;  %s574_s4 = smov [#allocation8]  }
  0x3c   :  { %438 = vmatpush3.bf16.msra.mxu0 %v435_v9  ;;  %v244_v23 = vsub.s32 %v241_v20, %v668_v21  ;;  %v401_v37 = vld [vmem:[%s705_s5] ss:$0 sm:$0xff]  ;;  %461 = vset.pattern.permute.xlu0 %v573_v53  ;;  %s387_s5 = sshll.u32 %s574_s4, 4  ;;  %s388_s5 = int_to_ptr.vmem [resolvable:$true] %s387_s5 }
  0x3d   :  { %440 = vmatprep.subr.bf16.mxu0 %v439_v13  ;;  %460 = vset.pattern.permute.xlu1 %v573_v53  ;;  %s536_s13 = scalar_lea.vmem %s388_s5, 32  ;;  %p541_p11 = scmp.lt.s32.totalorder %s388_s5, %s388_s5 }
  0x3e   :  { %448 = vmatpush3.bf16.msra.mxu1 %v447_v12  ;;  %p537_p10 = scmp.ne.s32.totalorder %s388_s5, %s536_s13  ;;  %p542_p12 = scmp.lt.s32.totalorder %s536_s13, %s536_s13 }
  0x40   :  { %442 = vmatpush3.bf16.msra.mxu0 %v439_v13  ;;  %p543_p13 = por %p542_p12, %p541_p11 }
  0x41   :  { %433 = vmatmul.mubr.msk.f32.vlgmr.msra.gmra.mrb[0].mxu1 %vm71_vm1, %v153_v15 }
  0x42   :  { %p544_p0 = pnand %p543_p13, %p537_p10 }
  0x43   :  { %422 = vmatmul.mubr.msk.f32.vlgmr.msra.gmra.mrb[0].mxu0 %vm71_vm1, %v66_v16 }
 0x114   :  { %v234_v24 = vpop.f32.mrb[0].mxu1 }
 0x115   :  { %v235_v25 = vadd.f32 %v399_v22, %v234_v24  ;;  %v434_v26 = vpop.f32.mrb[1].mxu1 }
 0x116   :  { %v423_v27 = vpop.f32.mrb[0].mxu0 }
 0x117   :  { %v245_v28 = vrot.slane %v235_v25, %v244_v23  ;;  %v144_v30 = vpop.f32.mrb[1].mxu0 }
 0x119   :  { %v246_v31 = vcombine.high %v245_v28, %v245_v28  ;;  %v253_v32 = vrot.slane %v245_v28, %v244_v23 }
 0x11b   :  { %v260_v33 = vrot.slane %v246_v31, %v244_v23  ;;  %v264_v34 = vrot.slane %v253_v32, %v263_v29 }
 0x11d   :  { %v268_v35 = vrot.slane %v260_v33, %v263_v29  ;;  %v271_v36 = vadd.f32 %v264_v34, %v144_v30 }
 0x11f   :  { %v272_v38 = vadd.f32 %v423_v27, %v268_v35  ;;  %v273_v39 = vmax.f32 %v271_v36, 0.0 }
 0x121   :  { %v274_v40 = vmax.f32 %v272_v38, 0.0  ;;  %v282_v41 = vmul.f32 %v401_v37, %v273_v39 }
 0x123   :  { %v284_v42 = vsel %vm71_vm1, %v282_v41, 0.0  ;;  %v283_v43 = vmul.f32 %v401_v37, %v274_v40 }
 0x124   :  { %285 = vadd.xlane.f32.xlu0 %v284_v42 }
 0x125   :  { %v287_v44 = vsel %vm71_vm1, %v283_v43, 0.0 }
 0x128   :  { %288 = vadd.xlane.f32.xlu0 %v287_v44 }
 0x1b1   :  { %v286_v46 = vpop.xlane.xlu0 %285 }
 0x1b2   :  { %v297_v49 = vrot.slane %v286_v46, %v296_v47 }
 0x1b5   :  { %v289_v48 = vpop.xlane.xlu0 %288 }
 0x1b6   :  { %v301_v50 = vrot.slane %v289_v48, %v296_v47 }
 0x1b8   :  { %v303_v51 = vsel %vm302_vm2, %v301_v50, %v297_v49 }
 0x1b9   :  { %v306_v52 = vsel %vm305_vm3, %v303_v51, -inf }
 0x1ba   :  { %307 = vmax.xlane.f32.xlu1 %v306_v52 }
 0x247   :  { %v308_v55 = vpop.xlane.xlu1 %307 }
 0x248   :  { %v313_v56 = vrot.slane %v308_v55, %v263_v29  ;;  %v317_v57 = vrot.slane %v308_v55, %v316_v54 }
 0x24a   :  { %v320_v58 = vsub.f32 %v286_v46, %v313_v56  ;;  %v321_v59 = vsub.f32 %v289_v48, %v317_v57 }
 0x24c   :  { %v322_v60 = vmul.f32 1.442695, %v320_v58  ;;  %v324_v61 = vmul.f32 1.442695, %v321_v59 }
 0x24e   :  { %462 = vpow2.f32 %v322_v60 }
 0x24f   :  { %464 = vpow2.f32 %v324_v61 }
 0x258   :  { %v463_v62 = vpop.eup %462 }
 0x259   :  { %v465_v63 = vpop.eup %464  ;;  %329 = vperm.xlu1 %460, %v463_v62  }
 0x25a   :  { %332 = vperm.xlu0 %461, %v465_v63  }
 0x2d8   :  { %v330_v0 = vpop.permute.xlu1 %329 }
 0x2d9   :  { %v333_v1 = vpop.permute.xlu0 %332  ;;  %v337_v2 = vrot.slane %v330_v0, %v296_v47 }
 0x2da   :  { %v341_v3 = vrot.slane %v333_v1, %v296_v47 }
 0x2dc   :  { %v342_v4 = vsel %vm302_vm2, %v341_v3, %v337_v2 }
 0x2dd   :  { %v344_v5 = vsel %vm305_vm3, %v342_v4, 0.0 }
 0x2de   :  { %345 = vadd.xlane.f32.xlu1 %v344_v5 }
 0x36b   :  { %v346_v6 = vpop.xlane.xlu1 %345 }
 0x36c   :  { %v351_v7 = vrot.slane %v346_v6, %v263_v29  ;;  %v355_v8 = vrot.slane %v346_v6, %v316_v54 }
 0x36e   :  { %466 = vrcp.f32 %v351_v7 }
 0x36f   :  { %468 = vrcp.f32 %v355_v8 }
 0x378   :  { %v467_v9 = vpop.eup %466 }
 0x379   :  { %v359_v10 = vmul.f32 %v467_v9, %v463_v62  ;;  %v469_v11 = vpop.eup %468 }
 0x37a   :  { %v361_v12 = vmul.f32 %v469_v11, %v465_v63 }
 0x37b   :  { %365 = vperm.xlu0 %461, %v359_v10  }
 0x37f   :  { %368 = vperm.xlu0 %461, %v361_v12  }
 0x3fa   :  { %v366_v13 = vpop.permute.xlu0 %365 }
 0x3fb   :  { %v373_v15 = vrot.slane %v366_v13, %v296_v47 }
 0x3fe   :  { %v369_v14 = vpop.permute.xlu0 %368 }
 0x3ff   :  { %v377_v16 = vrot.slane %v369_v14, %v296_v47 }
 0x401   :  { %v378_v17 = vsel %vm302_vm2, %v377_v16, %v373_v15 }
 0x402   :  { %380 = vst.msk [vmem:[#allocation8] sm:$0x3] %vm305_vm3, %v378_v17 }
 0x403   :  { %547 = shalt.err (!%p544_p0)
}
 0x404   :  { %s548_s16 = scalar_lea.hbm %s706_s6, 32 }
 0x405   :  { %p549_p1 = scmp.ne.s32.totalorder %s706_s6, %s548_s16  ;;  %p552_p2 = scmp.lt.u32.totalorder %s548_s16, %s706_s6 }
 0x407   :  { %p554_p3 = pnand %p552_p2, %p549_p1 }
 0x409   :  { %557 = shalt.err (!%p554_p3)
}
 0x40a   :  { %390 = dma.vmem_to_hbm [thread:$0]  %s388_s5, 32, %s706_s6, [#allocation4]  }
 0x40b   :  { %562 = dma.done.wait [#allocation4], 32  }
 0x40c   :  { %563 = vsyncadd [#allocation4], 4294967264 }
 0x40d   :  { %394 = vsyncpa [#allocation3], 1 }
 0x40e   :  { %395 = vsyncpa [#allocation6], 1 }
 0x40f   :  { %396 = vsyncpa [#allocation4], 1 }

</bundles_post_ra>
